<compile_context>
chip_gen: v6e
topology: v6e:2x2x1
jax: 0.10.0
libtpu: 0.0.40
codegen_flags: <defaults>
</compile_context>

<pallas_src>
import math
import functools

import jax
import jax.numpy as jnp
from jax.experimental import pallas as pl
from jax.experimental.pallas import tpu as pltpu


def _pick_tile(n, cap):
    """Largest tile <= cap that divides n and keeps the tiled dim either a multiple of
    128 or the full dimension (so BlockSpec (8,128) rules are always satisfied)."""
    if n <= cap:
        return n
    t = (cap // 128) * 128
    while t >= 128:
        if n % t == 0:
            return t
        t -= 128
    return n  # fall back to the full (untiled) dimension


# ---------------------------------------------------------------------------
# Kernel 1: pairwise (negative squared) distance for knn, PRE-TRANSPOSED.
#   out[b, j, i] = -|| x[b, :, i] - q[b, :, j] ||^2
# Queries tile the sublane axis, source points are lane-dense, so lax.top_k can run
# directly on the last axis (no XLA transpose of the (B, P, P2) matrix).
# Cross term 2*q.x runs on the MXU; |x|^2 is hoisted to the wrapper.
# ---------------------------------------------------------------------------
def _pdist_kernel(q_ref, xs_ref, xx_ref, out_ref):
    q = q_ref[0]                                                       # (tq, C) queries
    inner = jnp.dot(q, xs_ref[0], preferred_element_type=jnp.float32)  # (tq, P)  MXU
    qq = jnp.sum(q * q, axis=1, keepdims=True)                         # (tq, 1)
    out_ref[0] = 2.0 * inner - qq - xx_ref[0]                          # -||x_i - q_j||^2


def pairwise_neg_sq_dist_t(x, q):
    """x: (B, C, P) source points, q: (B, C, P2) queries -> (B, P2, P) of -squared
    distances, already transposed for top_k along the last axis."""
    B, C, P = x.shape
    P2 = q.shape[2]
    xs = x.astype(jnp.float32)
    qt = jnp.transpose(q, (0, 2, 1)).astype(jnp.float32)     # (B, P2, C): tiny transpose
    xx = jnp.sum(xs * xs, axis=1, keepdims=True)             # (B, 1, P): hoisted |x|^2

    # keep each (tq, P) f32 output buffer around <= ~4 MiB (safe for v7x's 64 MiB VMEM)
    cap = max(128, min(1024, ((4 << 20) // (4 * max(P, 1))) // 128 * 128))
    tq = _pick_tile(P2, cap)

    return pl.pallas_call(
        _pdist_kernel,
        out_shape=jax.ShapeDtypeStruct((B, P2, P), jnp.float32),
        grid_spec=pltpu.PrefetchScalarGridSpec(
            num_scalar_prefetch=0,
            grid=(B, P2 // tq),
            in_specs=[
                pl.BlockSpec((1, tq, C), lambda b, t: (b, t, 0)),
                pl.BlockSpec((1, C, P), lambda b, t: (b, 0, 0)),
                pl.BlockSpec((1, 1, P), lambda b, t: (b, 0, 0)),
            ],
            out_specs=pl.BlockSpec((1, tq, P), lambda b, t: (b, t, 0)),
        ),
        compiler_params=pltpu.CompilerParams(
            dimension_semantics=("parallel", "parallel"),
            vmem_limit_bytes=32 * 1024 * 1024),
    )(qt, xs, xx)


def knn_idx(x, x2, k, dilation=1):
    """torch knn(): for each query column of x2, indices of the k nearest columns of x.
    Returns (B, k, P2). (Dynamic_sampling_M always uses dilation=1.)"""
    pd_t = pairwise_neg_sq_dist_t(x, x2)                     # (B, P2, P), no big transpose
    # TODO(synk): torch.topk tie-breaking order is not guaranteed to match lax.top_k;
    #             irrelevant for generic float coordinates.
    _, idx = jax.lax.top_k(pd_t, k * dilation)               # (B, P2, k*dilation)
    idx = idx[:, :, ::dilation]                              # (B, P2, k)
    return jnp.transpose(idx, (0, 2, 1))                     # (B, k, P2)


def _gather_neighbours(x, idx):
    """x: (B, C, P), idx: (B, K, P2) -> (B, K, C, P2) with out[b,k,c,p] = x[b,c,idx[b,k,p]]."""
    g = jax.vmap(lambda xb, ib: xb[:, ib])(x, idx)           # (B, C, K, P2)
    return jnp.transpose(g, (0, 2, 1, 3))                    # (B, K, C, P2)


def dynamic_sampling_m(x, s_num, k):
    """Dynamic_sampling_M.forward (s_num <= P branch). Returns gathered neighbours
    channels-first as (B, K, C, s_num) (torch returns (B, C, s_num, K))."""
    B, C, P = x.shape
    assert s_num <= P
    length = math.ceil(math.sqrt(s_num))
    assert length * length == s_num, "num_points must be a perfect square (module assert)"
    mesh = jnp.arange(length, dtype=jnp.float32) / float(length)
    mesh01 = jnp.tile(mesh[None, :], (length, 1)).reshape(1, 1, s_num)
    mesh02 = jnp.tile(mesh[:, None], (1, length)).reshape(1, 1, s_num)
    mesh2 = jnp.tile(jnp.concatenate([mesh01, mesh02], axis=1), (B, 1, 1))   # (B, 2, s_num)

    point_x = x[:, :2, :]
    min_x = jnp.min(point_x, axis=2, keepdims=True)
    max_x = jnp.max(point_x, axis=2, keepdims=True)
    point_sample = mesh2 * (max_x - min_x) + min_x                            # (B, 2, s_num)

    idx1 = knn_idx(point_x, point_sample, 1)                                  # (B, 1, s_num)
    select_point = jax.vmap(lambda xb, ib: xb[:, ib])(x, idx1[:, 0, :])       # (B, C, s_num)

    idx2 = knn_idx(x[:, :3, :], select_point[:, :3, :], k)                    # (B, k, s_num)
    return _gather_neighbours(x, idx2)                                        # (B, k, C, s_num)


# ---------------------------------------------------------------------------
# Kernel 2: feature extraction hot path (channels on sublanes, points on lanes).
#   per-tile hoisted "base" = (folded PC weight) @ pc + biases            (64, tp)
#   per neighbour k:  feat_k = base + A @ [x5_k ; temp_k]                 (64, tp)  MXU
#                     h_k    = LeakyReLU(Wa1 @ feat_k + b)                (32, tp)  MXU
#                     logit_k = wa2 @ h_k + b                             (1,  tp)  MXU
#   online softmax over k on lane-dense (1, tp) logits -> agg (64, tp)
#   out = Wb1 @ agg + b   (Branch1), stored directly as (64, tile_p).
# ---------------------------------------------------------------------------
def _feature_kernel(xg_ref, a_ref, bc_ref, bcol_ref, wa1_ref, ba1_ref,
                    wa2_ref, ba2_ref, wb1_ref, bb1_ref, out_ref, *, k):
    pc = xg_ref[0, 0][0:3, :]                                        # (3, tp) centre xyz
    # per-tile constant part of the fused 1x1 convs: PC contribution + both biases
    base = jnp.dot(bc_ref[...], pc, preferred_element_type=jnp.float32) + bcol_ref[...]

    m = l = acc = None
    for kk in range(k):                                              # unrolled, K is small
        x5 = xg_ref[0, kk]                                           # (C, tp) raw channels
        diff = x5[0:3, :] - pc                                       # PA - PC
        temp = jnp.sqrt(jnp.sum(diff * diff, axis=0, keepdims=True))  # (1, tp)
        slab = jnp.concatenate([x5, temp], axis=0)                   # (C+1, tp)

        # fused conv(4->32) | PosEncoding(10->32), PC part already in `base`
        feat = base + jnp.dot(a_ref[...], slab, preferred_element_type=jnp.float32)  # (64, tp)

        # attention_mode: Conv2d(64->32) -> LeakyReLU(0.2) -> Conv2d(32->1)
        h = jnp.dot(wa1_ref[...], feat, preferred_element_type=jnp.float32) + ba1_ref[...]
        h = jnp.where(h > 0, h, 0.2 * h)
        logit = jnp.dot(wa2_ref[...], h, preferred_element_type=jnp.float32) + ba2_ref[...]

        # online softmax over the K neighbours (lane-dense (1, tp) statistics)
        if kk == 0:
            m, l, acc = logit, jnp.ones_like(logit), feat
        else:
            m_new = jnp.maximum(m, logit)
            a = jnp.exp(m - m_new)
            e = jnp.exp(logit - m_new)
            l = l * a + e
            acc = acc * a + feat * e
            m = m_new

    agg = acc * pl.reciprocal(l, approx=True)                        # (64, tp)
    # Branch1 (Conv1d 64->64), already (64, tile_p) = lane-dense output
    out_ref[0] = jnp.dot(wb1_ref[...], agg, preferred_element_type=jnp.float32) + bb1_ref[...]


def _full_spec(arr):
    nd = arr.ndim
    return pl.BlockSpec(arr.shape, lambda b, t, _nd=nd: (0,) * _nd)


def feature_extraction_layer_basic(x, num_points, params, k=8):
    """x: (B, 5, P) float32 (torch layout). Returns (B, 5 + 64, num_points)."""
    x = x.astype(jnp.float32)
    x1 = dynamic_sampling_m(x, num_points, k)            # (B, K, C, Ps) channels-first
    B, K, C, Ps = x1.shape
    assert C >= 5, "module uses x1[:, :5] / conv on x1[:, :4]"

    # --- fold conv(4->32) + PosEncoding(10->32) into per-source-channel weights ---
    # PosEncoding input = [PA, PC, PA-PC, temp]; with D = PA - PC:
    #   Wp@PEmb = (Wp_PA + Wp_D)@PA + (Wp_PC - Wp_D)@PC + wp_t*temp
    # -> A (64, C+1) applied to [x5 ; temp] per neighbour,
    #    Bc (64, 3) applied to PC once per tile (hoisted into `base`).
    wp = params["wpos"]                                  # (10, 32)  stored (in, out)
    a_w = jnp.zeros((64, C + 1), jnp.float32)
    a_w = a_w.at[0:32, 0:4].set(params["wconv"].T)                     # conv on x[:, :4]
    a_w = a_w.at[32:64, 0:3].set((wp[0:3] + wp[6:9]).T)                # PA + (PA-PC) part
    a_w = a_w.at[32:64, C:C + 1].set(wp[9:10].T)                       # temp column
    bc_w = jnp.zeros((64, 3), jnp.float32).at[32:64].set((wp[3:6] - wp[6:9]).T)
    bcol = jnp.concatenate([params["bconv"][0], params["bpos"][0]])[:, None]   # (64, 1)

    wa1 = params["watt1"].T                              # (32, 64)
    ba1 = params["batt1"][0][:, None]                    # (32, 1)
    wa2 = params["watt2"]                                # (1, 32)
    ba2 = params["batt2"]                                # (1, 1)
    wb1 = params["wb1"].T                                # (64, 64)
    bb1 = params["bb1"][0][:, None]                      # (64, 1)

    weights = [a_w, bc_w, bcol, wa1, ba1, wa2, ba2, wb1, bb1]

    tile_p = _pick_tile(Ps, 512)
    # v7x: keep >= 2 balanced grid steps for the two TensorCores when possible
    while (B * (Ps // tile_p) < 2 and tile_p >= 256
           and (tile_p // 2) % 128 == 0 and Ps % (tile_p // 2) == 0):
        tile_p //= 2
    n_pt = Ps // tile_p

    kernel = functools.partial(_feature_kernel, k=K)

    out = pl.pallas_call(
        kernel,
        out_shape=jax.ShapeDtypeStruct((B, 64, Ps), jnp.float32),
        grid_spec=pltpu.PrefetchScalarGridSpec(
            num_scalar_prefetch=0,
            grid=(B, n_pt),
            in_specs=[pl.BlockSpec((1, K, C, tile_p), lambda b, t: (b, 0, 0, t))]
                     + [_full_spec(w) for w in weights],
            out_specs=pl.BlockSpec((1, 64, tile_p), lambda b, t: (b, 0, t)),
        ),
        compiler_params=pltpu.CompilerParams(
            dimension_semantics=("parallel", "parallel"),
            vmem_limit_bytes=32 * 1024 * 1024),
    )(x1, *weights)                                      # (B, 64, Ps), lane-dense

    # final concat: [x1[:, :5, :, 0], Branch1(feature)] along the channel axis
    pos = x1[:, 0, :5, :]                                # (B, 5, Ps), no transpose needed
    return jnp.concatenate([pos, out], axis=1)           # (B, 69, Ps)


def init_params(key):
    """Deterministic synthetic parameters (weights stored as (in, out) for matmul form)."""
    ks = jax.random.split(key, 10)

    def w(k_, shape, fan_in):
        return jax.random.normal(k_, shape, jnp.float32) / jnp.sqrt(jnp.float32(fan_in))

    return dict(
        wpos=w(ks[0], (10, 32), 10), bpos=0.1 * w(ks[1], (1, 32), 1),
        wconv=w(ks[2], (4, 32), 4),  bconv=0.1 * w(ks[3], (1, 32), 1),
        watt1=w(ks[4], (64, 32), 64), batt1=0.1 * w(ks[5], (1, 32), 1),
        watt2=w(ks[6], (1, 32), 32),  batt2=0.1 * w(ks[7], (1, 1), 1),
        wb1=w(ks[8], (64, 64), 64),   bb1=0.1 * w(ks[9], (1, 64), 1),
    )


if __name__ == "__main__":
    key = jax.random.PRNGKey(0)
    kx, kp = jax.random.split(key)

    B, C, P = 2, 5, 16            # x: (B, 5, P) point cloud with 5 channels (xyz + 2 extra)
    num_points = 16               # must be a perfect square (see Dynamic_sampling_M assert)
    neighb = 8

    x = jax.random.normal(kx, (B, C, P), dtype=jnp.float32)
    params = init_params(kp)

    out = feature_extraction_layer_basic(x, num_points, params, k=neighb)
    out = jax.block_until_ready(out)

    assert out.shape == (B, 5 + 64, num_points), out.shape
    assert bool(jnp.isfinite(out).all())
    print("KERNEL_OK")
</pallas_src>

<mosaic_0001>
module attributes {stable_mosaic.version = 11 : i64} {
  func.func @_pdist_kernel(%arg0: i32, %arg1: i32, %arg2: memref<1x16x2xf32, #tpu.memory_space<vmem>>, %arg3: memref<1x2x16xf32, #tpu.memory_space<vmem>>, %arg4: memref<1x1x16xf32, #tpu.memory_space<vmem>>, %arg5: memref<1x16x16xf32, #tpu.memory_space<vmem>>) attributes {dimension_semantics = [#tpu.dimension_semantics<parallel>, #tpu.dimension_semantics<parallel>], iteration_bounds = array<i64: 2, 1>, scalar_prefetch = 0 : i64, scratch_operands = 0 : i64, tpu.core_type = #tpu.core_type<tc>, window_params = [{transform_indices = @transform_0, window_bounds = array<i64: 1, 16, 2>}, {transform_indices = @transform_1, window_bounds = array<i64: 1, 2, 16>}, {transform_indices = @transform_2, window_bounds = array<i64: 1, 1, 16>}, {transform_indices = @transform_3, window_bounds = array<i64: 1, 16, 16>}]} {
    %c0 = arith.constant 0 : index
    %c0_0 = arith.constant 0 : index
    %c0_1 = arith.constant 0 : index
    %0 = vector.load %arg2[%c0, %c0_0, %c0_1] : memref<1x16x2xf32, #tpu.memory_space<vmem>>, vector<1x16x2xf32>
    %1 = vector.shape_cast %0 : vector<1x16x2xf32> to vector<16x2xf32>
    %c0_2 = arith.constant 0 : index
    %c0_3 = arith.constant 0 : index
    %c0_4 = arith.constant 0 : index
    %2 = vector.load %arg3[%c0_2, %c0_3, %c0_4] : memref<1x2x16xf32, #tpu.memory_space<vmem>>, vector<1x2x16xf32>
    %3 = vector.shape_cast %2 : vector<1x2x16xf32> to vector<2x16xf32>
    %cst = arith.constant dense<0.000000e+00> : vector<16x16xf32>
    %4 = tpu.matmul %1, %3, %cst {dimension_numbers = #tpu.dot_dimension_numbers<[1], [0], [0], [1], [0, 0, 1, 1], [], []>} : vector<16x2xf32>, vector<2x16xf32>, vector<16x16xf32> -> vector<16x16xf32>
    %5 = arith.mulf %1, %1 : vector<16x2xf32>
    %cst_5 = arith.constant dense<0.000000e+00> : vector<16xf32>
    %6 = vector.multi_reduction <add>, %5, %cst_5 [1] : vector<16x2xf32> to vector<16xf32>
    %7 = vector.shape_cast %6 : vector<16xf32> to vector<16x1xf32>
    %cst_6 = arith.constant 2.000000e+00 : f32
    %8 = vector.broadcast %cst_6 : f32 to vector<16x16xf32>
    %9 = arith.mulf %8, %4 : vector<16x16xf32>
    %10 = vector.broadcast %7 : vector<16x1xf32> to vector<16x16xf32>
    %11 = arith.subf %9, %10 : vector<16x16xf32>
    %c0_7 = arith.constant 0 : index
    %c0_8 = arith.constant 0 : index
    %c0_9 = arith.constant 0 : index
    %12 = vector.load %arg4[%c0_7, %c0_8, %c0_9] : memref<1x1x16xf32, #tpu.memory_space<vmem>>, vector<1x1x16xf32>
    %13 = vector.shape_cast %12 : vector<1x1x16xf32> to vector<1x16xf32>
    %14 = vector.broadcast %13 : vector<1x16xf32> to vector<16x16xf32>
    %15 = arith.subf %11, %14 : vector<16x16xf32>
    %c0_10 = arith.constant 0 : index
    %c0_11 = arith.constant 0 : index
    %c0_12 = arith.constant 0 : index
    %16 = vector.load %arg5[%c0_10, %c0_11, %c0_12] : memref<1x16x16xf32, #tpu.memory_space<vmem>>, vector<1x16x16xf32>
    %17 = vector.shape_cast %16 : vector<1x16x16xf32> to vector<16x16xf32>
    %18 = vector.shape_cast %15 : vector<16x16xf32> to vector<1x16x16xf32>
    tpu.vector_store %arg5[%c0_10, %c0_11, %c0_12], %18 {strides = array<i32>} : memref<1x16x16xf32, #tpu.memory_space<vmem>>, vector<1x16x16xf32>,
    return
  }
  func.func @transform_0(%arg0: i32, %arg1: i32) -> (i32, i32, i32) {
    %c0_i32 = arith.constant 0 : i32
    %c0_i32_0 = arith.constant 0 : i32
    return %arg0, %arg1, %c0_i32 : i32, i32, i32
  }
  func.func @transform_1(%arg0: i32, %arg1: i32) -> (i32, i32, i32) {
    %c0_i32 = arith.constant 0 : i32
    %c0_i32_0 = arith.constant 0 : i32
    %c0_i32_1 = arith.constant 0 : i32
    return %arg0, %c0_i32, %c0_i32_0 : i32, i32, i32
  }
  func.func @transform_2(%arg0: i32, %arg1: i32) -> (i32, i32, i32) {
    %c0_i32 = arith.constant 0 : i32
    %c0_i32_0 = arith.constant 0 : i32
    %c0_i32_1 = arith.constant 0 : i32
    return %arg0, %c0_i32, %c0_i32_0 : i32, i32, i32
  }
  func.func @transform_3(%arg0: i32, %arg1: i32) -> (i32, i32, i32) {
    %c0_i32 = arith.constant 0 : i32
    %c0_i32_0 = arith.constant 0 : i32
    return %arg0, %arg1, %c0_i32 : i32, i32, i32
  }
}

</mosaic_0001>

<bundles_post_ra>
// kernel: tpu_custom_call.1
= control target key start
LH: loop header
LB: loop body
LE: loop exit
PB: predicated region body
PF: predicated region fallthrough
CT: control target
= control target key end

     0   :  { %8 = vsyncpa [#allocation3], 0  ;;  %s766_s0 = inlined_call_operand.vmem [shape: f32[2,16,2], index: 0, kind: input, shape index: {}]   ;;  %s767_s1 = inlined_call_operand.vmem [shape: f32[2,2,16], index: 1, kind: input, shape index: {}]   ;;  %s768_s2 = inlined_call_operand.vmem [shape: f32[2,1,16], index: 2, kind: input, shape index: {}]   ;;  %s769_s3 = inlined_call_operand.hbm [shape: f32[2,16,16], index: 3, kind: output, shape index: {}]  }
   0x1   :  { %10 = vsyncpa [#allocation3 + $0x1], 0  ;;  %s646_s12 = smov 0   ;;  %s648_s13 = smov 0  }
   0x2   :  { %s650_s14 = smov 0   ;;  %s652_s15 = smov 0  }
   0x3   :  { %s654_s16 = smov 0   ;;  %s656_s17 = smov 0  }
   0x4 LB: > { %s460_s18 = sadd.s32 4294967295, %s621_s17   ;;  %s461_s19 = sadd.s32 4294967294, %s621_s17   ;;  %s621_s17 = sphi %s656_s17, %s16_s17   ;;  %s617_s16 = sphi %s654_s16, %s776_s16   ;;  %s613_s15 = sphi %s652_s15, %s775_s15   ;;  %s609_s14 = sphi %s650_s14, %s774_s14   ;;  %s605_s13 = sphi %s648_s13, %s773_s13   ;;  %s601_s12 = sphi %s646_s12, %s772_s12  }
   0x5   : > { %s28_s20 = sadd.s32 1, %s617_s16  ;;  %s117_s21 = sadd.s32 1, %s609_s14 }
   0x6   : > { %p30_p0 = scmp.ge.s32.totalorder %s28_s20, 2  ;;  %p127_p1 = scmp.ne.s32.totalorder %s609_s14, %s605_s13 }
   0x7   : > { %p128_p2 = scmp.eq.s32.totalorder %s460_s18, 1  ;;  %p133_p3 = scmp.ne.s32.totalorder %s605_s13, %s601_s12 }
   0x8   : > { %s778_s20 = smov (%p30_p0, %s28_s20), 0  ;;  %p134_p5 = scmp.eq.s32.totalorder %s461_s19, 1 }
   0x9   : > { %p686_p4 = por %p128_p2, %p127_p1  ;;  %s112_s23 = ssub.s32 %s617_s16, %s778_s20 }
   0xa   : > { %p464_p6 = scmp.ge.s32.totalorder %s621_s17, 1  ;;  %p115_p7 = scmp.eq.s32.totalorder %s112_s23, 0 }
   0xb   : > { %p693_p8 = por %p134_p5, %p133_p3  ;;  %p178_p9 = scmp.lt.s32.totalorder %s621_s17, 3 }
   0xc   : > { %s699_s25 = scalar_select %p115_p7, %s609_s14, %s117_s21  }
   0xd   : > { %p179_p10 = pnand %p464_p6, %p178_p9 }
   0xe   : > { %p214_p11 = scmp.lt.s32.totalorder (!%p179_p10), %s613_s15, 1  ;;  %s210_s8 = sand.u32 (!%p179_p10), 1, %s605_s13  }
   0xf   : > { %182 = sbr.rel (%p179_p10) target bundleno = 242 (0xf2), region = 32  ;;  %s465_s9 = sshll.u32 (!%p179_p10), %s210_s8, 4 }
  0x10   : > { %s212_s19 = scalar_lea.vmem (!%p179_p10), [#allocation2], %s465_s9  ;;  %s479_s23 = sshll.u32 (!%p179_p10), %s613_s15, 8 }
  0x11   : > { %s360_s21 = sshll.u32 (!%p179_p10), %s212_s19, 4  ;;  %s717_s29 = scalar_lea.hbm (!%p179_p10), %s769_s3, %s479_s23  ;;  %s719_s21 = int_to_ptr.vmem [resolvable:$true] %s360_s21 }
  0x12   : > { %s545_s30 = scalar_lea.vmem (!%p179_p10), %s719_s21, 256 }
  0x13   : > { %p546_p12 = scmp.ne.s32.totalorder (!%p179_p10), %s719_s21, %s545_s30 }
  0x14   : > { %s215_s26 = scalar_select %p214_p11, %s613_s15, 1  ;;  %vm241_vm0 = vcmask 1041408   ;;  %vm234_vm1 = vcmask 15360   ;;  %vm341_vm2 = vcmask 130048  }
  0x15   : > { %p547_p13 = pnand %p546_p12, %p686_p4  ;;  %s623_s15 = smov [#allocation2]  }
  0x16   : > { %s468_s27 = sshll.u32 %s215_s26, 1  ;;  %s478_s28 = sshll.u32 %s215_s26, 4 }
  0x17   : > { %s226_s4 = scalar_lea.vmem %s767_s1, %s468_s27  ;;  %s221_s7 = scalar_lea.vmem %s766_s0, %s478_s28 }
  0x18   : > { %v233_v0 = vld [vmem:[%s226_s4] sm:$0x3]  ;;  %v232_v2 = vld [vmem:[%s221_s7 + $0x8] sm:$0xff]  ;;  %s229_s18 = scalar_lea.vmem %s768_s2, %s215_s26  ;;  %s721_s26 = scalar_lea.sflag [#allocation3], %s210_s8 }
  0x19   : > { %v231_v1 = vld [vmem:[%s221_s7] sm:$0xff]  ;;  %483 = vmatprep.subr.msk.mxu0 %vm241_vm0, %v233_v0  ;;  %v321_v4 = vmul.f32 %v232_v2, %v232_v2  ;;  %p548_p0 = pneg %p547_p13  ;;  %s549_s4 = sshll.u32 %s623_s15, 4  ;;  %s550_s4 = int_to_ptr.vmem [resolvable:$false] %s549_s4 }
  0x1a   : > { %485 = vmatprep.mubr.msk.f32.mxu0 %vm234_vm1, %v231_v1  ;;  %v320_v3 = vmul.f32 %v231_v1, %v231_v1  ;;  %484 = vmatpush3.msk.msra.mxu0 %vm241_vm0, %v233_v0  ;;  %v472_v11 = vld [vmem:[%s229_s18] ss:$0 sm:$0xff]  ;;  %s551_s5 = scalar_lea.vmem %s550_s4, 512  ;;  %p552_p1 = scmp.lt.s32.totalorder %s719_s21, %s550_s4 }
  0x1b   : > { %486 = vmatmul.mubr.msk.f32.vlgmr.msra.gmra.mxu0 %vm234_vm1, %v232_v2  ;;  %v325_v6 = vsel %vm234_vm1, %v321_v4, 0.0  ;;  %p553_p2 = scmp.lt.s32.totalorder %s551_s5, %s545_s30 }
  0x1c   : > { %v322_v5 = vsel %vm234_vm1, %v320_v3, 0.0 }
  0x1d   : > { %323 = vadd.xlane.f32.xlu0 %v322_v5  ;;  %p554_p3 = por %p553_p2, %p552_p1 }
  0x1f   : > { %p555_p5 = pnand %p554_p3, %p548_p0 }
  0x21   : > { %326 = vadd.xlane.f32.xlu0 %v325_v6 }
  0xa6   : > { %v324_v7 = vpop.xlane.xlu0 %323 }
  0xaa   : > { %v327_v9 = vpop.xlane.xlu0 %326 }
  0xdb   : > { %v487_v8 = vpop.f32.mrf.mxu0 }
  0xdc   : > { %v329_v10 = vmul.f32 2.0, %v487_v8 }
  0xdd   : > { %v311_v12 = vpop.f32.mrf.mxu0 }
  0xde   : > { %v331_v13 = vsub.f32 %v329_v10, %v327_v9  ;;  %v328_v14 = vmul.f32 2.0, %v311_v12 }
  0xe0   : > { %v340_v15 = vsub.f32 %v331_v13, %v472_v11  ;;  %v330_v16 = vsub.f32 %v328_v14, %v324_v7 }
  0xe2   : > { %343 = vst.msk [vmem:[%s212_s19 + $0x8] sm:$0xff] %vm341_vm2, %v340_v15  ;;  %v339_v17 = vsub.f32 %v330_v16, %v472_v11 }
  0xe4   : > { %342 = vst.msk [vmem:[%s212_s19] sm:$0xff] %vm341_vm2, %v339_v17 }
  0xe5   : > { %558 = shalt.err (!%p555_p5)
}
  0xe6   : > { %s559_s6 = scalar_lea.hbm %s717_s29, 256  ;;  %s563_s9 = scalar_lea.hbm %s769_s3, 512 }
  0xe7   : > { %p560_p6 = scmp.ne.s32.totalorder %s717_s29, %s559_s6  ;;  %p564_p10 = scmp.lt.s32.totalorder %s717_s29, %s769_s3 }
  0xe8   : > { %p565_p11 = scmp.lt.s32.totalorder %s563_s9, %s559_s6 }
  0xe9   : > { %p561_p7 = pnand %p560_p6, %p686_p4 }
  0xea   : > { %p566_p12 = por %p565_p11, %p564_p10 }
  0xeb   : > { %p562_p9 = pneg %p561_p7 }
  0xed   : > { %p567_p13 = pnand %p566_p12, %p562_p9 }
  0xef   : > { %570 = shalt.err (!%p567_p13)
}
  0xf0   : > { %s624_s18 = smov 128   ;;  %s625_s19 = smov 8  }
  0xf1   : > { %488 = dma.vmem_to_hbm [thread:$0]  (%p686_p4), %s719_s21, 256, %s717_s29, %s721_s26, %s624_s18, %s624_s18, %s625_s19  }
  0xf2 PF: > { %p494_p0 = scmp.ge.s32.totalorder %s621_s17, 2  ;;  %s375_s23 = sand.u32 1, %s601_s12  }
  0xf3   : > { %s376_s27 = scalar_lea.sflag [#allocation3], %s375_s23 }
  0xf4   : > { %p491_p1 = pnand %p494_p0, %p693_p8 }
  0xf6   : > { %p492_p2 = pneg %p491_p1 }
  0xf8   : > { %596 = dma.done.wait (%p492_p2), %s376_s27, 256  }
  0xf9   : > { %598 = vsyncadd (%p492_p2), %s376_s27, 4294967040  ;;  %s16_s17 = sadd.s32 1, %s621_s17   ;;  %s772_s12 = smov %s605_s13 }
  0xfa   : > { %p13_p3 = scmp.ge.s32.totalorder %s16_s17, 4   ;;  %s773_s13 = smov %s609_s14 }
  0xfb   : > { %s774_s14 = smov %s699_s25  ;;  %s775_s15 = smov %s617_s16 }
  0xfc   : > { %s776_s16 = smov %s778_s20  ;;  %15 = sbr.rel (!%p13_p3) target bundleno = 4 (0x4), region = 73 }
 0x101   :  { %381 = vsyncpa [#allocation3], 1 }
 0x102   :  { %383 = vsyncpa [#allocation3 + $0x1], 1 }

</bundles_post_ra>
